<compile_context>
chip_gen: v5e
topology: v5e:2x2
jax: 0.10.0
libtpu: 0.0.40
codegen_flags: <defaults>
</compile_context>

<pallas_src>
import functools
import math

import jax
import jax.numpy as jnp
from jax.experimental import pallas as pl
from jax.experimental.pallas import tpu as pltpu

LANE = 128


# ----------------------------------------------------------------------------
# small helpers
# ----------------------------------------------------------------------------
def _round_up(v, m):
    return (v + m - 1) // m * m


def _act(y, act):
    if act == "relu":
        return jnp.maximum(y, 0.0)
    if act == "swish":
        return y * jax.nn.sigmoid(y)
    return y


def _round_width(width, multiplier, min_width=8, divisor=8):
    # faithful to pytorchvideo.models.x3d.round_width
    if not multiplier:
        return width
    width *= multiplier
    min_width = min_width or divisor
    width_out = max(min_width, int(width + divisor / 2) // divisor * divisor)
    if width_out < 0.9 * width:
        width_out += divisor
    return int(width_out)


@functools.lru_cache(maxsize=None)
def _num_tensorcores():
    # v4 / v5p / v7x expose two TensorCores per chip (megacore); v5e / v6e have one.
    try:
        kind = jax.devices()[0].device_kind.lower()
    except Exception:
        return 1
    return 2 if any(tag in kind for tag in ("v4", "v5p", "v7")) else 1


# ----------------------------------------------------------------------------
# matmul kernels: 1x1x1 convs / im2col stem conv, fused BN scale+bias,
# optional residual add (identity or fused strided projection), activation.
# bf16 inputs on the MXU, f32 accumulation.
# ----------------------------------------------------------------------------
def _mm_kernel(x_ref, w_ref, s_ref, b_ref, o_ref, *, act):
    y = jnp.dot(x_ref[...], w_ref[...], preferred_element_type=jnp.float32)
    y = y * s_ref[...] + b_ref[...]
    o_ref[...] = _act(y, act).astype(o_ref.dtype)


def _mm_res_kernel(x_ref, w_ref, s_ref, b_ref, r_ref, o_ref, *, act):
    y = jnp.dot(x_ref[...], w_ref[...], preferred_element_type=jnp.float32)
    y = y * s_ref[...] + b_ref[...] + r_ref[...].astype(jnp.float32)
    o_ref[...] = _act(y, act).astype(o_ref.dtype)


def _pick_tm(M, n_cores):
    # v5e/v6e (1 TC): one big tile (<=512 rows); v4/v5p/v7x (2 TCs): prefer >=2 steps.
    if n_cores > 1:
        for tm in (512, 256, 128, 64, 32, 16, 8):
            if M % tm == 0 and M // tm >= 2:
                return tm
    for tm in (512, 256, 128, 64, 32, 16, 8):
        if M % tm == 0:
            return tm
    return _round_up(M, 8)


def _matmul_fused(x2d, w, scale, bias, res, act):
    """(M,K)@(K,N) bf16 matmul with fused per-column scale/bias, optional residual, act."""
    M, K = x2d.shape
    N = w.shape[1]
    tm = _pick_tm(M, _num_tensorcores())
    Mp = _round_up(M, tm)
    Kp = _round_up(K, LANE)
    Np = _round_up(N, LANE)

    # In the main network K, N are already 128-multiples and M % tm == 0, so the pads /
    # final slice below are no-ops (only the tiny stem im2col pads K).
    if (Mp, Kp) != (M, K):
        x2d = jnp.pad(x2d, ((0, Mp - M), (0, Kp - K)))
    if (Kp, Np) != (K, N):
        w = jnp.pad(w, ((0, Kp - K), (0, Np - N)))
    if Np != N:
        scale = jnp.pad(scale, ((0, 0), (0, Np - N)))
        bias = jnp.pad(bias, ((0, 0), (0, Np - N)))

    in_specs = [
        pl.BlockSpec((tm, Kp), lambda i: (i, 0)),
        pl.BlockSpec((Kp, Np), lambda i: (0, 0)),
        pl.BlockSpec((1, Np), lambda i: (0, 0)),
        pl.BlockSpec((1, Np), lambda i: (0, 0)),
    ]
    args = [x2d, w, scale, bias]
    if res is not None:
        if (Mp, Np) != res.shape:
            res = jnp.pad(res, ((0, Mp - res.shape[0]), (0, Np - res.shape[1])))
        in_specs.append(pl.BlockSpec((tm, Np), lambda i: (i, 0)))
        args.append(res)
        kern = functools.partial(_mm_res_kernel, act=act)
    else:
        kern = functools.partial(_mm_kernel, act=act)

    out = pl.pallas_call(
        kern,
        out_shape=jax.ShapeDtypeStruct((Mp, Np), jnp.bfloat16),
        grid=(Mp // tm,),
        in_specs=in_specs,
        out_specs=pl.BlockSpec((tm, Np), lambda i: (i, 0)),
        compiler_params=pltpu.CompilerParams(dimension_semantics=("parallel",)),
    )(*args)
    if (Mp, Np) != (M, N):
        out = out[:M, :N]
    return out


@functools.partial(jax.jit, static_argnames=("act",))
def pointwise_conv(x, w, scale, bias, res=None, *, act="none"):
    """1x1x1 conv + fused BN (+ optional identity residual) + activation.  NTHWC, padded C."""
    N, T, H, W, Cin = x.shape
    Cout = w.shape[1]
    x2 = x.reshape(N * T * H * W, Cin)
    r2 = None if res is None else res.reshape(N * T * H * W, Cout)
    y = _matmul_fused(x2, w, scale, bias, r2, act)
    return y.reshape(N, T, H, W, Cout)


def _mm_res_proj_kernel(b_ref, wc_ref, sc_ref, bc_ref,
                        x_ref, ws_ref, ss_ref, bs_ref, o_ref, *, act, cx):
    # b_ref : (1, 1, Ho, Wo, Ci)       depthwise-branch output tile
    # x_ref : (1, 1, Ho, 1, Wo, sw*Cx) block input; H/W subsampling is folded into the
    #         BlockSpec (even rows) and a free lane-packing reshape (even columns).
    # o_ref : (1, 1, Ho, Wo, Co)
    Ho = o_ref.shape[2]
    wc = wc_ref[...]
    ws = ws_ref[...]
    sc = sc_ref[...]
    bc = bc_ref[...]
    ss = ss_ref[...]
    bs = bs_ref[...]
    for h in range(Ho):
        y = jnp.dot(b_ref[0, 0, h], wc, preferred_element_type=jnp.float32)
        y = y * sc + bc
        xs = x_ref[0, 0, h, 0][:, :cx]          # (Wo, Cx): phase-0 (even W) lanes
        y2 = jnp.dot(xs, ws, preferred_element_type=jnp.float32)
        y = y + y2 * ss + bs
        o_ref[0, 0, h] = _act(y, act).astype(o_ref.dtype)


@functools.partial(jax.jit, static_argnames=("stride", "act"))
def pointwise_conv_proj(b, x, wc, sc, bc, ws, ss, bs, *, stride, act):
    """conv_c (1x1x1)+BN fused with the strided shortcut projection (+BN) and activation.

    b : (N, To, Ho, Wo, Ci) depthwise-branch output.
    x : (N, T, H, W, Cx)    block input at full resolution; the strided rows/cols are
        selected by the BlockSpec / lane packing, so no strided-slice copy is made.
    """
    N, To, Ho, Wo, Ci = b.shape
    _, T, H, W, Cx = x.shape
    st, sh, sw = stride
    Co = wc.shape[1]
    assert H // sh == Ho and W // sw == Wo
    # zero-copy re-layout: split H into (Ho, sh) and fold the W phase into the lane dim
    xs6 = x.reshape(N, T, Ho, sh, Wo, sw * Cx)

    return pl.pallas_call(
        functools.partial(_mm_res_proj_kernel, act=act, cx=Cx),
        out_shape=jax.ShapeDtypeStruct((N, To, Ho, Wo, Co), jnp.bfloat16),
        grid=(N, To),
        in_specs=[
            pl.BlockSpec((1, 1, Ho, Wo, Ci), lambda n, t: (n, t, 0, 0, 0)),
            pl.BlockSpec((Ci, Co), lambda n, t: (0, 0)),
            pl.BlockSpec((1, Co), lambda n, t: (0, 0)),
            pl.BlockSpec((1, Co), lambda n, t: (0, 0)),
            pl.BlockSpec((1, 1, Ho, 1, Wo, sw * Cx),
                         lambda n, t: (n, t * st, 0, 0, 0, 0)),
            pl.BlockSpec((Cx, Co), lambda n, t: (0, 0)),
            pl.BlockSpec((1, Co), lambda n, t: (0, 0)),
            pl.BlockSpec((1, Co), lambda n, t: (0, 0)),
        ],
        out_specs=pl.BlockSpec((1, 1, Ho, Wo, Co), lambda n, t: (n, t, 0, 0, 0)),
        compiler_params=pltpu.CompilerParams(
            dimension_semantics=("parallel", "parallel")),
    )(b, wc, sc, bc, xs6, ws, ss, bs)


# ----------------------------------------------------------------------------
# depthwise 3-D conv kernel with fused BN + activation (+ fused SE + Swish)
# ----------------------------------------------------------------------------
def _dw_kernel(*refs, kt, kh, kw, st, sh, sw, pt, act, hb, se, c, tpadded):
    if se:
        (x_ref, w_ref, s_ref, b_ref,
         w1_ref, b1_ref, w2_ref, b2_ref, o_ref, y_scr) = refs
    else:
        x_ref, w_ref, s_ref, b_ref, o_ref = refs

    To, Ho, Wo, C = o_ref.shape[1], o_ref.shape[2], o_ref.shape[3], o_ref.shape[4]
    Tin = x_ref.shape[1]
    s = s_ref[...]
    b = b_ref[...]
    ktaps = kt * kh * kw
    # hoisted per-tap weight rows (loaded/broadcast once, not per (t, h0) iteration)
    w_taps = [w_ref[i:i + 1, :] for i in range(ktaps)]

    if se:
        pool = jnp.zeros((1, C), jnp.float32)

    for t in range(To):
        for h0 in range(0, Ho, hb):
            rows = min(hb, Ho - h0)
            # two partial accumulators break the serial add chain over the taps
            acc = [jnp.zeros((rows, Wo, C), jnp.float32),
                   jnp.zeros((rows, Wo, C), jnp.float32)]
            for dt in range(kt):
                t_in = t * st + dt - (0 if tpadded else pt)
                if not tpadded and not (0 <= t_in < Tin):
                    continue                       # temporal halo handled by skipping
                for dh in range(kh):
                    r0 = h0 * sh + dh              # sh == 1 or rows == 1
                    # one slab load per (t_in, dh); kw taps derived in-register below
                    slab = x_ref[0, t_in, r0:r0 + rows].astype(jnp.float32)
                    for dw_ in range(kw):
                        tap = (dt * kh + dh) * kw + dw_
                        if sw == 1:
                            xs = slab[:, dw_:dw_ + Wo, :]
                        else:
                            q0, p = divmod(dw_, sw)
                            xs = slab[:, q0:q0 + Wo, p * c:(p + 1) * c]
                        acc[tap & 1] = acc[tap & 1] + xs * w_taps[tap]
            y = (acc[0] + acc[1]) * s + b
            if se:
                pool = pool + jnp.sum(jnp.sum(y, axis=0), axis=0, keepdims=True)
                y_scr[t, h0:h0 + rows] = y         # keep pre-gate values in f32
            else:
                o_ref[0, t, h0:h0 + rows] = _act(y, act).astype(o_ref.dtype)

    if se:
        # Squeeze-Excitation fused in-kernel (whole per-batch block is already in VMEM).
        pooled = pool * (1.0 / float(To * Ho * Wo))
        h1 = jnp.dot(pooled, w1_ref[...].astype(jnp.float32),
                     preferred_element_type=jnp.float32) + b1_ref[...]
        h1 = jnp.maximum(h1, 0.0)
        gate = jax.nn.sigmoid(
            jnp.dot(h1, w2_ref[...].astype(jnp.float32),
                    preferred_element_type=jnp.float32) + b2_ref[...])
        g = gate.reshape(1, 1, C)
        for t in range(To):
            o_ref[0, t] = _act(y_scr[t] * g, act).astype(o_ref.dtype)


@functools.partial(jax.jit, static_argnames=("ksize", "stride", "act"))
def depthwise_conv(x, w, scale, bias, se_params=None, *, ksize, stride, act):
    """Depthwise 3-D conv ('same' pad, native stride) + fused BN + [SE] + activation."""
    N, T, H, W, C = x.shape
    kt, kh, kw = ksize
    st, sh, sw = stride
    pt, ph, pw = kt // 2, kh // 2, kw // 2
    To = (T + 2 * pt - kt) // st + 1
    Ho = (H + 2 * ph - kh) // sh + 1
    Wo = (W + 2 * pw - kw) // sw + 1

    spatial = (kh > 1 or kw > 1)
    if spatial:
        Wp0 = W + 2 * pw
        extra_w = (-Wp0) % sw
        Tp, Hp, Wp = T + 2 * pt, H + 2 * ph, Wp0 + extra_w
        # TODO(synk): this halo pad is still one XLA copy; fold it into the kernel
        # (pl.ANY + DMA into zero-initialised VMEM scratch) to remove it entirely.
        xp = jnp.pad(x, ((0, 0), (pt, pt), (ph, ph), (pw, pw + extra_w), (0, 0)))
        if sw > 1:
            # zero-copy lane packing: strided W taps become plain lane slices in-kernel
            Wq, Cq = Wp // sw, sw * C
            xp = xp.reshape(N, Tp, Hp, Wq, Cq)
        else:
            Wq, Cq = Wp, C
        tpadded = True
    else:
        # temporal-only conv (stem): no halo copy at all, edge taps are skipped in-kernel
        xp = x
        Tp, Hp, Wq, Cq = T, H, W, C
        tpadded = False

    # Row-block: keep each f32 accumulator at <= ~8 vregs (two partial accumulators).
    # TODO(synk): strided layers keep hb=1 (needs a strided pl.ds row load to lift).
    hb = 1 if sh != 1 else max(1, min(Ho, 8192 // (Wo * C)))
    se = se_params is not None
    ktaps = kt * kh * kw

    in_specs = [
        pl.BlockSpec((1, Tp, Hp, Wq, Cq), lambda n: (n, 0, 0, 0, 0)),
        pl.BlockSpec((ktaps, C), lambda n: (0, 0)),
        pl.BlockSpec((1, C), lambda n: (0, 0)),
        pl.BlockSpec((1, C), lambda n: (0, 0)),
    ]
    args = [xp, w, scale, bias]
    scratch = []
    if se:
        w1, b1, w2, b2 = se_params
        Crp = w1.shape[1]
        in_specs += [
            pl.BlockSpec((C, Crp), lambda n: (0, 0)),
            pl.BlockSpec((1, Crp), lambda n: (0, 0)),
            pl.BlockSpec((Crp, C), lambda n: (0, 0)),
            pl.BlockSpec((1, C), lambda n: (0, 0)),
        ]
        args += [w1, b1, w2, b2]
        scratch = [pltpu.VMEM((To, Ho, Wo, C), jnp.float32)]

    kern = functools.partial(_dw_kernel, kt=kt, kh=kh, kw=kw, st=st, sh=sh, sw=sw,
                             pt=pt, act=act, hb=hb, se=se, c=C, tpadded=tpadded)
    return pl.pallas_call(
        kern,
        out_shape=jax.ShapeDtypeStruct((N, To, Ho, Wo, C), jnp.bfloat16),
        grid=(N,),
        in_specs=in_specs,
        out_specs=pl.BlockSpec((1, To, Ho, Wo, C), lambda n: (n, 0, 0, 0, 0)),
        scratch_shapes=scratch,
        compiler_params=pltpu.CompilerParams(
            dimension_semantics=("parallel",),
            vmem_limit_bytes=32 * 1024 * 1024),
    )(*args)


@jax.jit
def stem_spatial_conv(x, w):
    """Stem 1x3x3 conv, stride (1,2,2), pad (0,1,1), bias=False (im2col + Pallas matmul)."""
    # TODO(synk): im2col done in XLA (9 strided slices + concat); negligible at Cin=1.
    N, T, H, W, Cin = x.shape
    Coutp = w.shape[1]
    Ho = (H + 2 - 3) // 2 + 1
    Wo = (W + 2 - 3) // 2 + 1
    xp = jnp.pad(x, ((0, 0), (0, 0), (1, 1), (1, 1), (0, 0)))
    cols = []
    for dh in range(3):
        for dw_ in range(3):
            cols.append(xp[:, :, dh:dh + 2 * (Ho - 1) + 1:2,
                           dw_:dw_ + 2 * (Wo - 1) + 1:2, :])
    patches = jnp.concatenate(cols, axis=-1).astype(jnp.bfloat16)  # (N,T,Ho,Wo,9*Cin)
    ones = jnp.ones((1, Coutp), jnp.float32)
    zeros = jnp.zeros((1, Coutp), jnp.float32)
    y = _matmul_fused(patches.reshape(N * T * Ho * Wo, 9 * Cin), w,
                      ones, zeros, None, "none")
    return y.reshape(N, T, Ho, Wo, Coutp)


# ----------------------------------------------------------------------------
# parameter construction (deterministic, synthetic, X3D-XS shapes, pre-padded)
# ----------------------------------------------------------------------------
def _he(key, shape, fan_in):
    return jax.random.normal(key, shape, jnp.float32) * (2.0 / fan_in) ** 0.5


def _pad_mat(m, rp, cp, dtype=jnp.bfloat16):
    r, c = m.shape
    return jnp.pad(m, ((0, rp - r), (0, cp - c))).astype(dtype)


def _pad_vec(v, cp):
    return jnp.pad(v, (0, cp - v.shape[0])).reshape(1, cp).astype(jnp.float32)


def _bn(key, c, cp):
    k1, k2 = jax.random.split(key)
    scale = 1.0 + 0.05 * jax.random.normal(k1, (c,), jnp.float32)
    bias = 0.05 * jax.random.normal(k2, (c,), jnp.float32)
    return _pad_vec(scale, cp), _pad_vec(bias, cp)


def init_params(key, in_channels=1, out_channels=(24, 24, 48, 96, 192)):
    keys = iter(jax.random.split(key, 512))
    nk = lambda: next(keys)

    c0 = out_channels[0]
    c0p = _round_up(c0, LANE)
    params = {
        "in_channels": in_channels,
        "out_channels": tuple(out_channels),
        "stem": {
            "w_spatial": _pad_mat(_he(nk(), (9 * in_channels, c0), 9 * in_channels),
                                  9 * in_channels, c0p),
            "w_temporal": _pad_mat(_he(nk(), (5, c0), 5), 5, c0p, jnp.float32),
        },
    }
    params["stem"]["bn_scale"], params["stem"]["bn_bias"] = _bn(nk(), c0, c0p)

    base_depths = (1, 2, 5, 3)          # X3D base, depth factor 2.2 -> (3,5,11,7)
    depth_factor = 2.2
    bottleneck_factor = 2.25
    se_ratio = 0.0625

    stages = []
    dim_in = c0
    for si, dim_out in enumerate(out_channels[1:]):
        depth = int(math.ceil(base_depths[si] * depth_factor))
        dim_inner = int(bottleneck_factor * dim_out)
        se_dim = _round_width(dim_inner, se_ratio)
        out_p = _round_up(dim_out, LANE)
        inner_p = _round_up(dim_inner, LANE)
        se_p = _round_up(se_dim, LANE)
        blocks = []
        for bi in range(depth):
            cin = dim_in if bi == 0 else dim_out
            cin_p = _round_up(cin, LANE)
            stride = (1, 2, 2) if bi == 0 else (1, 1, 1)
            use_se = (bi % 2 == 0)
            blk = {
                "stride": stride,
                "use_se": use_se,
                "wa": _pad_mat(_he(nk(), (cin, dim_inner), cin), cin_p, inner_p),
                "wb": _pad_mat(_he(nk(), (27, dim_inner), 27), 27, inner_p, jnp.float32),
                "wc": _pad_mat(_he(nk(), (dim_inner, dim_out), dim_inner), inner_p, out_p),
            }
            blk["sa"], blk["ba"] = _bn(nk(), dim_inner, inner_p)
            blk["sb"], blk["bb"] = _bn(nk(), dim_inner, inner_p)
            blk["sc"], blk["bc"] = _bn(nk(), dim_out, out_p)
            if use_se:
                blk["se_w1"] = _pad_mat(_he(nk(), (dim_inner, se_dim), dim_inner),
                                        inner_p, se_p)
                blk["se_b1"] = jnp.zeros((1, se_p), jnp.float32)
                blk["se_w2"] = _pad_mat(_he(nk(), (se_dim, dim_inner), se_dim),
                                        se_p, inner_p)
                blk["se_b2"] = jnp.zeros((1, inner_p), jnp.float32)
            if cin != dim_out or stride != (1, 1, 1):
                blk["ws"] = _pad_mat(_he(nk(), (cin, dim_out), cin), cin_p, out_p)
                if cin != dim_out:
                    blk["ss"], blk["bs"] = _bn(nk(), dim_out, out_p)
                else:
                    blk["ss"] = _pad_vec(jnp.ones((dim_out,), jnp.float32), out_p)
                    blk["bs"] = jnp.zeros((1, out_p), jnp.float32)
            blocks.append(blk)
        stages.append(blocks)
        dim_in = dim_out
    params["stages"] = stages
    return params


# ----------------------------------------------------------------------------
# forward pass (mirrors Resnet3d.forward: returns [x, b0(x), ..., b4(...)])
# ----------------------------------------------------------------------------
def run_stem(x_raw, sp):
    y = stem_spatial_conv(x_raw, sp["w_spatial"])
    return depthwise_conv(y, sp["w_temporal"], sp["bn_scale"], sp["bn_bias"], None,
                          ksize=(5, 1, 1), stride=(1, 1, 1), act="relu")


def run_block(x, blk):
    stride = blk["stride"]
    # branch2: conv_a (1x1x1) -> BN -> ReLU
    a = pointwise_conv(x, blk["wa"], blk["sa"], blk["ba"], None, act="relu")
    # conv_b (3x3x3 depthwise, native stride) -> BN -> [fused SE] -> Swish
    se_params = None
    if blk["use_se"]:
        se_params = (blk["se_w1"], blk["se_b1"], blk["se_w2"], blk["se_b2"])
    b = depthwise_conv(a, blk["wb"], blk["sb"], blk["bb"], se_params,
                       ksize=(3, 3, 3), stride=stride, act="swish")
    if "ws" in blk:
        # conv_c + BN fused with the (strided) shortcut projection + BN, then ReLU;
        # the strided input is read in-kernel -- no XLA subsample copy, no extra call.
        return pointwise_conv_proj(b, x, blk["wc"], blk["sc"], blk["bc"],
                                   blk["ws"], blk["ss"], blk["bs"],
                                   stride=stride, act="relu")
    # identity shortcut: conv_c + BN + add + ReLU fused in one matmul kernel
    return pointwise_conv(b, blk["wc"], blk["sc"], blk["bc"], x, act="relu")


def _to_ncthw(y, c):
    return jnp.transpose(y[..., :c].astype(jnp.float32), (0, 4, 1, 2, 3))


def resnet3d_forward(params, x_ncthw):
    # public API is NCTHW (like the PyTorch module); kernels use padded-C NTHWC bf16.
    oc = params["out_channels"]
    x_raw = jnp.transpose(x_ncthw, (0, 2, 3, 4, 1)).astype(jnp.float32)
    outputs = [x_ncthw]
    y = run_stem(x_raw, params["stem"])
    outputs.append(_to_ncthw(y, oc[0]))
    for stage, c in zip(params["stages"], oc[1:]):
        for blk in stage:
            y = run_block(y, blk)
        outputs.append(_to_ncthw(y, c))
    return outputs


# ----------------------------------------------------------------------------
if __name__ == "__main__":
    key = jax.random.PRNGKey(0)
    k_x, k_p = jax.random.split(key)

    in_channels = 1
    x = jax.random.normal(k_x, (2, in_channels, 4, 32, 32), jnp.float32)  # NCTHW

    params = init_params(k_p, in_channels=in_channels)
    outs = resnet3d_forward(params, x)
    outs = jax.block_until_ready(outs)

    # sanity: [x, 24, 24, 48, 96, 192] channels, spatial halving per block
    expected_channels = [in_channels, 24, 24, 48, 96, 192]
    expected_spatial = [32, 16, 8, 4, 2, 1]
    assert len(outs) == 6
    for o, c, s in zip(outs, expected_channels, expected_spatial):
        assert o.shape == (2, c, 4, s, s), o.shape
        assert bool(jnp.all(jnp.isfinite(o)))

    print("KERNEL_OK")
</pallas_src>

<mosaic_0001>
module attributes {stable_mosaic.version = 11 : i64} {
  func.func @_mm_kernel(%arg0: i32, %arg1: memref<512x128xbf16, #tpu.memory_space<vmem>>, %arg2: memref<128x128xbf16, #tpu.memory_space<vmem>>, %arg3: memref<1x128xf32, #tpu.memory_space<vmem>>, %arg4: memref<1x128xf32, #tpu.memory_space<vmem>>, %arg5: memref<512x128xbf16, #tpu.memory_space<vmem>>) attributes {dimension_semantics = [#tpu.dimension_semantics<parallel>], iteration_bounds = array<i64: 4>, scalar_prefetch = 0 : i64, scratch_operands = 0 : i64, tpu.core_type = #tpu.core_type<tc>, window_params = [{transform_indices = @transform_0, window_bounds = array<i64: 512, 128>}, {pipeline_mode = #tpu.pipeline_mode<synchronous>, transform_indices = @transform_1, window_bounds = array<i64: 128, 128>}, {pipeline_mode = #tpu.pipeline_mode<synchronous>, transform_indices = @transform_2, window_bounds = array<i64: 1, 128>}, {pipeline_mode = #tpu.pipeline_mode<synchronous>, transform_indices = @transform_3, window_bounds = array<i64: 1, 128>}, {transform_indices = @transform_4, window_bounds = array<i64: 512, 128>}]} {
    %c0 = arith.constant 0 : index
    %c0_0 = arith.constant 0 : index
    %0 = vector.load %arg1[%c0, %c0_0] : memref<512x128xbf16, #tpu.memory_space<vmem>>, vector<512x128xbf16>
    %c0_1 = arith.constant 0 : index
    %c0_2 = arith.constant 0 : index
    %1 = vector.load %arg2[%c0_1, %c0_2] : memref<128x128xbf16, #tpu.memory_space<vmem>>, vector<128x128xbf16>
    %cst = arith.constant dense<0.000000e+00> : vector<512x128xf32>
    %2 = tpu.matmul %0, %1, %cst {dimension_numbers = #tpu.dot_dimension_numbers<[1], [0], [0], [1], [0, 0, 1, 1], [], []>} : vector<512x128xbf16>, vector<128x128xbf16>, vector<512x128xf32> -> vector<512x128xf32>
    %c0_3 = arith.constant 0 : index
    %c0_4 = arith.constant 0 : index
    %3 = vector.load %arg3[%c0_3, %c0_4] : memref<1x128xf32, #tpu.memory_space<vmem>>, vector<1x128xf32>
    %4 = vector.broadcast %3 : vector<1x128xf32> to vector<512x128xf32>
    %5 = arith.mulf %2, %4 : vector<512x128xf32>
    %c0_5 = arith.constant 0 : index
    %c0_6 = arith.constant 0 : index
    %6 = vector.load %arg4[%c0_5, %c0_6] : memref<1x128xf32, #tpu.memory_space<vmem>>, vector<1x128xf32>
    %7 = vector.broadcast %6 : vector<1x128xf32> to vector<512x128xf32>
    %8 = arith.addf %5, %7 : vector<512x128xf32>
    %9 = arith.truncf %8 : vector<512x128xf32> to vector<512x128xbf16>
    %c0_7 = arith.constant 0 : index
    %c0_8 = arith.constant 0 : index
    %10 = vector.load %arg5[%c0_7, %c0_8] : memref<512x128xbf16, #tpu.memory_space<vmem>>, vector<512x128xbf16>
    tpu.vector_store %arg5[%c0_7, %c0_8], %9 {strides = array<i32>} : memref<512x128xbf16, #tpu.memory_space<vmem>>, vector<512x128xbf16>,
    return
  }
  func.func @transform_0(%arg0: i32) -> (i32, i32) {
    %c0_i32 = arith.constant 0 : i32
    %c0_i32_0 = arith.constant 0 : i32
    return %arg0, %c0_i32 : i32, i32
  }
  func.func @transform_1(%arg0: i32) -> (i32, i32) {
    %c0_i32 = arith.constant 0 : i32
    %c0_i32_0 = arith.constant 0 : i32
    %c0_i32_1 = arith.constant 0 : i32
    return %c0_i32, %c0_i32_0 : i32, i32
  }
  func.func @transform_2(%arg0: i32) -> (i32, i32) {
    %c0_i32 = arith.constant 0 : i32
    %c0_i32_0 = arith.constant 0 : i32
    %c0_i32_1 = arith.constant 0 : i32
    return %c0_i32, %c0_i32_0 : i32, i32
  }
  func.func @transform_3(%arg0: i32) -> (i32, i32) {
    %c0_i32 = arith.constant 0 : i32
    %c0_i32_0 = arith.constant 0 : i32
    %c0_i32_1 = arith.constant 0 : i32
    return %c0_i32, %c0_i32_0 : i32, i32
  }
  func.func @transform_4(%arg0: i32) -> (i32, i32) {
    %c0_i32 = arith.constant 0 : i32
    %c0_i32_0 = arith.constant 0 : i32
    return %arg0, %c0_i32 : i32, i32
  }
}

</mosaic_0001>

<bundles_post_ra>
// kernel: stem_spatial_conv.1
= control target key start
LH: loop header
LB: loop body
LE: loop exit
PB: predicated region body
PF: predicated region fallthrough
CT: control target
= control target key end

     0   :  { %9 = vsyncpa [#allocation3], 0  ;;  %s1911_s0 = inlined_call_operand.vmem [shape: bf16[2048,128], index: 0, kind: input, shape index: {}]   ;;  %s1912_s1 = inlined_call_operand.vmem [shape: bf16[128,128], index: 1, kind: input, shape index: {}]   ;;  %s1913_s2 = inlined_call_operand.vmem [shape: f32[1,128], index: 2, kind: input, shape index: {}]   ;;  %s1914_s3 = inlined_call_operand.vmem [shape: f32[1,128], index: 3, kind: input, shape index: {}]   ;;  %s1915_s4 = inlined_call_operand.hbm [shape: bf16[2048,128], index: 4, kind: output, shape index: {}]  }
   0x1   :  { %11 = vsyncpa [#allocation3 + $0x1], 0  ;;  %s1592_s15 = smov 0   ;;  %s1594_s16 = smov 0  }
   0x2   :  { %s1596_s17 = smov 0   ;;  %s1598_s18 = smov 0  }
   0x3 LB: > { %s1613_s19 = sadd.s32 4294967295, %s1563_s18   ;;  %s1030_s20 = sadd.s32 4294967294, %s1563_s18   ;;  %s1563_s18 = sphi %s1598_s18, %s1921_s18   ;;  %s1559_s17 = sphi %s1596_s17, %s1920_s17   ;;  %s1555_s16 = sphi %s1594_s16, %s1919_s16   ;;  %s1551_s15 = sphi %s1592_s15, %s1918_s15  }
   0x4   : > { %s1617_s21 = sadd.s32 1, %s1563_s18   ;;  %s113_s22 = sadd.s32 1, %s1559_s17 }
   0x5   : > { %s110_s23 = ssub.s32 %s1563_s18, %s1617_s21  ;;  %p123_p0 = scmp.ne.s32.totalorder %s1559_s17, %s1555_s16 }
   0x6   : > { %p111_p1 = scmp.eq.s32.totalorder %s110_s23, 0  ;;  %p124_p2 = scmp.eq.s32.totalorder %s1613_s19, 3 }
   0x7   : > { %p129_p3 = scmp.ne.s32.totalorder %s1555_s16, %s1551_s15  ;;  %p130_p4 = scmp.eq.s32.totalorder %s1030_s20, 3 }
   0x8   : > { %s1628_s24 = scalar_select %p111_p1, %s1559_s17, %s113_s22  }
   0x9   : > { %p1630_p5 = por %p124_p2, %p123_p0  ;;  %p1634_p6 = por %p130_p4, %p129_p3 }
   0xa   : > { %p1033_p7 = scmp.ge.s32.totalorder %s1563_s18, 1  ;;  %p166_p8 = scmp.lt.s32.totalorder %s1563_s18, 5 }
   0xc   : > { %p167_p9 = pnand %p1033_p7, %p166_p8 }
   0xd   : > { %s1035_s9 = sshll.u32 (!%p167_p9), %s1613_s19, 6  ;;  %s189_s7 = sand.u32 (!%p167_p9), 1, %s1555_s16  }
   0xe   : > { %170 = sbr.rel (%p167_p9) target bundleno = 315 (0x13b), region = 36  ;;  %p193_p10 = scmp.lt.s32.totalorder (!%p167_p9), %s1035_s9, 255 }
   0xf   : > { %s1034_s10 = sshll.u32 (!%p167_p9), %s189_s7, 8  ;;  %s1242_s12 = sshll.u32 (!%p167_p9), %s1613_s19, 8 }
  0x10   : > { %s1725_s11 = scalar_lea.vmem (!%p167_p9), [#allocation2], %s1034_s10  ;;  %s964_s20 = scalar_lea.hbm (!%p167_p9), %s1915_s4, %s1242_s12 }
  0x11   : > { %s965_s19 = sshll.u32 (!%p167_p9), %s1725_s11, 4  ;;  %s953_s23 = scalar_lea.sflag (!%p167_p9), [#allocation3], %s189_s7  ;;  %s966_s19 = int_to_ptr.vmem [resolvable:$true] %s965_s19 }
  0x12   : > { %s1521_s5 = scalar_lea.hbm (!%p167_p9), %s1915_s4, 1024 }
  0x13   : > { %v1241_v0 = vld [vmem:[%s1912_s1 + $0x38] sm:$0xff]  ;;  %v1240_v1 = vld [vmem:[%s1912_s1 + $0x30] sm:$0xff]  ;;  %v1239_v2 = vld [vmem:[%s1912_s1 + $0x28] sm:$0xff]  ;;  %s1923_s9 = smov (!%p193_p10, %s1035_s9), 255 }
  0x14   : > { %519 = vmatpush.bf16.msra.mxu0 %v1241_v0  ;;  %1434 = vmatpush.bf16.msra.mxu1 %v1241_v0  ;;  %v1238_v3 = vld [vmem:[%s1912_s1 + $0x20] sm:$0xff]  ;;  %v1237_v4 = vld [vmem:[%s1912_s1 + $0x18] sm:$0xff]  ;;  %v1236_v5 = vld [vmem:[%s1912_s1 + $0x10] sm:$0xff]  ;;  %s1036_s22 = sshll.u32 %s1923_s9, 2 }
  0x15   : > { %1435 = vmatpush.bf16.msra.mxu2 %v1241_v0  ;;  %1436 = vmatpush.bf16.msra.mxu3 %v1241_v0  ;;  %v1235_v6 = vld [vmem:[%s1912_s1 + $0x8] sm:$0xff]  ;;  %v1234_v7 = vld [vmem:[%s1912_s1] sm:$0xff]  ;;  %s1668_s30 = scalar_lea.vmem %s1911_s0, %s1036_s22  ;;  %s967_s22 = sshll.u32 %s964_s20, 4  ;;  %s968_s22 = int_to_ptr.hbm [resolvable:$true] %s967_s22 }
  0x16   : > { %v1202_v8 = vld [vmem:[%s1668_s30] sm:$0xff]  ;;  %v1203_v12 = vld [vmem:[%s1668_s30 + $0x8] sm:$0xff]  ;;  %v1204_v16 = vld [vmem:[%s1668_s30 + $0x10] sm:$0xff]  ;;  %s1515_s27 = sshra.s32 %s968_s22, 4  ;;  %s1516_s27 = int_to_ptr.hbm [resolvable:$true] %s1515_s27 }
  0x17   : > { %v1210_v9 = vld [vmem:[%s1668_s30 + $0x40] sm:$0xff]  ;;  %v1211_v13 = vld [vmem:[%s1668_s30 + $0x48] sm:$0xff]  ;;  %v1212_v17 = vld [vmem:[%s1668_s30 + $0x50] sm:$0xff]  ;;  %s1517_s28 = scalar_lea.hbm %s1516_s27, 256  ;;  %p1522_p0 = scmp.lt.s32.totalorder %s1516_s27, %s1915_s4 }
  0x18   : > { %520 = vmatpush.bf16.msra.mxu0 %v1240_v1  ;;  %1437 = vmatpush.bf16.msra.mxu1 %v1240_v1  ;;  %v1218_v10 = vld [vmem:[%s1668_s30 + $0x80] sm:$0xff]  ;;  %v1219_v14 = vld [vmem:[%s1668_s30 + $0x88] sm:$0xff]  ;;  %v1220_v18 = vld [vmem:[%s1668_s30 + $0x90] sm:$0xff]  ;;  %p1518_p11 = scmp.ne.s32.totalorder %s1516_s27, %s1517_s28  ;;  %p1523_p1 = scmp.lt.s32.totalorder %s1521_s5, %s1517_s28 }
  0x19   : > { %1438 = vmatpush.bf16.msra.mxu2 %v1240_v1  ;;  %1439 = vmatpush.bf16.msra.mxu3 %v1240_v1  ;;  %v1226_v11 = vld [vmem:[%s1668_s30 + $0xc0] sm:$0xff]  ;;  %v1227_v15 = vld [vmem:[%s1668_s30 + $0xc8] sm:$0xff]  ;;  %v1228_v19 = vld [vmem:[%s1668_s30 + $0xd0] sm:$0xff] }
  0x1a   : > { %v1205_v20 = vld [vmem:[%s1668_s30 + $0x18] sm:$0xff]  ;;  %v1206_v24 = vld [vmem:[%s1668_s30 + $0x20] sm:$0xff]  ;;  %v1207_v28 = vld [vmem:[%s1668_s30 + $0x28] sm:$0xff]  ;;  %p1519_p12 = pnand %p1518_p11, %p1630_p5  ;;  %p1524_p2 = por %p1523_p1, %p1522_p0 }
  0x1b   : > { %v1213_v21 = vld [vmem:[%s1668_s30 + $0x58] sm:$0xff]  ;;  %v1214_v25 = vld [vmem:[%s1668_s30 + $0x60] sm:$0xff]  ;;  %v1215_v29 = vld [vmem:[%s1668_s30 + $0x68] sm:$0xff] }
  0x1c   : > { %521 = vmatpush.bf16.msra.mxu0 %v1239_v2  ;;  %1440 = vmatpush.bf16.msra.mxu1 %v1239_v2  ;;  %v1221_v22 = vld [vmem:[%s1668_s30 + $0x98] sm:$0xff]  ;;  %v1222_v26 = vld [vmem:[%s1668_s30 + $0xa0] sm:$0xff]  ;;  %v1223_v30 = vld [vmem:[%s1668_s30 + $0xa8] sm:$0xff]  ;;  %p1520_p13 = pneg %p1519_p12 }
  0x1d   : > { %1441 = vmatpush.bf16.msra.mxu2 %v1239_v2  ;;  %1442 = vmatpush.bf16.msra.mxu3 %v1239_v2  ;;  %v1229_v23 = vld [vmem:[%s1668_s30 + $0xd8] sm:$0xff]  ;;  %v1230_v27 = vld [vmem:[%s1668_s30 + $0xe0] sm:$0xff]  ;;  %v1231_v31 = vld [vmem:[%s1668_s30 + $0xe8] sm:$0xff] }
  0x1e   : > { %v1208_v32 = vld [vmem:[%s1668_s30 + $0x30] sm:$0xff]  ;;  %v1209_v36 = vld [vmem:[%s1668_s30 + $0x38] sm:$0xff]  ;;  %v1705_v42 = vld [vmem:[%s1913_s2] ss:$0 sm:$0xff]  ;;  %p1525_p3 = pnand %p1524_p2, %p1520_p13 }
  0x1f   : > { %v1216_v33 = vld [vmem:[%s1668_s30 + $0x70] sm:$0xff]  ;;  %v1217_v37 = vld [vmem:[%s1668_s30 + $0x78] sm:$0xff]  ;;  %v1712_v44 = vld [vmem:[%s1914_s3] ss:$0 sm:$0xff] }
  0x20   : > { %522 = vmatpush.bf16.msra.mxu0 %v1238_v3  ;;  %1443 = vmatpush.bf16.msra.mxu1 %v1238_v3  ;;  %v1224_v34 = vld [vmem:[%s1668_s30 + $0xb0] sm:$0xff]  ;;  %v1225_v38 = vld [vmem:[%s1668_s30 + $0xb8] sm:$0xff] }
  0x21   : > { %1444 = vmatpush.bf16.msra.mxu2 %v1238_v3  ;;  %1445 = vmatpush.bf16.msra.mxu3 %v1238_v3  ;;  %v1232_v35 = vld [vmem:[%s1668_s30 + $0xf0] sm:$0xff]  ;;  %v1233_v39 = vld [vmem:[%s1668_s30 + $0xf8] sm:$0xff] }
  0x24   : > { %523 = vmatpush.bf16.msra.mxu0 %v1237_v4  ;;  %1446 = vmatpush.bf16.msra.mxu1 %v1237_v4 }
  0x25   : > { %1447 = vmatpush.bf16.msra.mxu2 %v1237_v4  ;;  %1448 = vmatpush.bf16.msra.mxu3 %v1237_v4 }
  0x28   : > { %524 = vmatpush.bf16.msra.mxu0 %v1236_v5  ;;  %1449 = vmatpush.bf16.msra.mxu1 %v1236_v5 }
  0x29   : > { %1450 = vmatpush.bf16.msra.mxu2 %v1236_v5  ;;  %1451 = vmatpush.bf16.msra.mxu3 %v1236_v5 }
  0x2c   : > { %525 = vmatpush.bf16.msra.mxu0 %v1235_v6  ;;  %1452 = vmatpush.bf16.msra.mxu1 %v1235_v6 }
  0x2d   : > { %1453 = vmatpush.bf16.msra.mxu2 %v1235_v6  ;;  %1454 = vmatpush.bf16.msra.mxu3 %v1235_v6 }
  0x30   : > { %526 = vmatpush.bf16.msra.mxu0 %v1234_v7  ;;  %1455 = vmatpush.bf16.msra.mxu1 %v1234_v7 }
  0x31   : > { %1456 = vmatpush.bf16.msra.mxu2 %v1234_v7  ;;  %1457 = vmatpush.bf16.msra.mxu3 %v1234_v7 }
  0x33   : > { %527 = vmatmul.bf16.vlgmr.msra.gmra.mxu0 %v1202_v8  ;;  %567 = vmatmul.bf16.vlgmr.msra.gmra.mxu1 %v1210_v9 }
  0x34   : > { %607 = vmatmul.bf16.vlgmr.msra.gmra.mxu2 %v1218_v10  ;;  %647 = vmatmul.bf16.vlgmr.msra.gmra.mxu3 %v1226_v11 }
  0x43   : > { %532 = vmatmul.bf16.gmra.mxu0 %v1203_v12  ;;  %572 = vmatmul.bf16.gmra.mxu1 %v1211_v13 }
  0x44   : > { %612 = vmatmul.bf16.gmra.mxu2 %v1219_v14  ;;  %652 = vmatmul.bf16.gmra.mxu3 %v1227_v15 }
  0x53   : > { %537 = vmatmul.bf16.gmra.mxu0 %v1204_v16  ;;  %577 = vmatmul.bf16.gmra.mxu1 %v1212_v17 }
  0x54   : > { %617 = vmatmul.bf16.gmra.mxu2 %v1220_v18  ;;  %657 = vmatmul.bf16.gmra.mxu3 %v1228_v19 }
  0x63   : > { %542 = vmatmul.bf16.gmra.mxu0 %v1205_v20  ;;  %582 = vmatmul.bf16.gmra.mxu1 %v1213_v21 }
  0x64   : > { %622 = vmatmul.bf16.gmra.mxu2 %v1221_v22  ;;  %662 = vmatmul.bf16.gmra.mxu3 %v1229_v23 }
  0x73   : > { %547 = vmatmul.bf16.gmra.mxu0 %v1206_v24  ;;  %587 = vmatmul.bf16.gmra.mxu1 %v1214_v25 }
  0x74   : > { %627 = vmatmul.bf16.gmra.mxu2 %v1222_v26  ;;  %667 = vmatmul.bf16.gmra.mxu3 %v1230_v27 }
  0x83   : > { %552 = vmatmul.bf16.gmra.mxu0 %v1207_v28  ;;  %592 = vmatmul.bf16.gmra.mxu1 %v1215_v29 }
  0x84   : > { %632 = vmatmul.bf16.gmra.mxu2 %v1223_v30  ;;  %672 = vmatmul.bf16.gmra.mxu3 %v1231_v31 }
  0x93   : > { %557 = vmatmul.bf16.gmra.mxu0 %v1208_v32  ;;  %597 = vmatmul.bf16.gmra.mxu1 %v1216_v33 }
  0x94   : > { %637 = vmatmul.bf16.gmra.mxu2 %v1224_v34  ;;  %677 = vmatmul.bf16.gmra.mxu3 %v1232_v35 }
  0xa3   : > { %562 = vmatmul.bf16.gmra.mxu0 %v1209_v36  ;;  %602 = vmatmul.bf16.gmra.mxu1 %v1217_v37 }
  0xa4   : > { %642 = vmatmul.bf16.gmra.mxu2 %v1225_v38  ;;  %682 = vmatmul.bf16.gmra.mxu3 %v1233_v39 }
  0xb0   : > { %v528_v40 = vpop.f32.mrf.mxu0  ;;  %v568_v41 = vpop.f32.mrf.mxu1 }
  0xb1   : > { %v692_v43 = vmul.f32 %v1705_v42, %v528_v40  ;;  %v708_v45 = vmul.f32 %v1705_v42, %v568_v41 }
  0xb3   : > { %v760_v52 = vadd.f32 %v1712_v44, %v692_v43  ;;  %v776_v53 = vadd.f32 %v1712_v44, %v708_v45 }
  0xb7   : > { %v608_v46 = vpop.f32.mrf.mxu2  ;;  %v648_v47 = vpop.f32.mrf.mxu3 }
  0xb8   : > { %v530_v48 = vpop.f32.mrf.mxu0  ;;  %v570_v49 = vpop.f32.mrf.mxu1  ;;  %v724_v58 = vmul.f32 %v1705_v42, %v608_v46  ;;  %v740_v59 = vmul.f32 %v1705_v42, %v648_v47 }
  0xb9   : > { %v693_v50 = vmul.f32 %v1705_v42, %v530_v48  ;;  %v709_v51 = vmul.f32 %v1705_v42, %v570_v49 }
  0xba   : > { %v792_v2 = vadd.f32 %v1712_v44, %v724_v58  ;;  %v808_v3 = vadd.f32 %v1712_v44, %v740_v59 }
  0xbb   : > { %v761_v54 = vadd.f32 %v1712_v44, %v693_v50  ;;  %v777_v55 = vadd.f32 %v1712_v44, %v709_v51 }
  0xbd   : > { %v1246_v56 = vpack.c.bf16 %v761_v54, %v760_v52  ;;  %v1286_v57 = vpack.c.bf16 %v777_v55, %v776_v53 }
  0xbf   : > { %1247 = vst [vmem:[%s1725_s11] sm:$0xff] %v1246_v56   ;;  %v610_v60 = vpop.f32.mrf.mxu2  ;;  %v650_v61 = vpop.f32.mrf.mxu3 }
  0xc0   : > { %1410 = vst [vmem:[%s1725_s11 + $0x40] sm:$0xff] %v1286_v57   ;;  %v725_v62 = vmul.f32 %v1705_v42, %v610_v60  ;;  %v741_v63 = vmul.f32 %v1705_v42, %v650_v61  ;;  %v533_v0 = vpop.f32.mrf.mxu0  ;;  %v573_v1 = vpop.f32.mrf.mxu1 }
  0xc1   : > { %v694_v8 = vmul.f32 %v1705_v42, %v533_v0  ;;  %v710_v9 = vmul.f32 %v1705_v42, %v573_v1 }
  0xc2   : > { %v793_v4 = vadd.f32 %v1712_v44, %v725_v62  ;;  %v809_v5 = vadd.f32 %v1712_v44, %v741_v63 }
  0xc3   : > { %v762_v16 = vadd.f32 %v1712_v44, %v694_v8  ;;  %v778_v17 = vadd.f32 %v1712_v44, %v710_v9 }
  0xc4   : > { %v1326_v6 = vpack.c.bf16 %v793_v4, %v792_v2  ;;  %v1366_v7 = vpack.c.bf16 %v809_v5, %v808_v3 }
  0xc6   : > { %1418 = vst [vmem:[%s1725_s11 + $0x80] sm:$0xff] %v1326_v6  }
  0xc7   : > { %1426 = vst [vmem:[%s1725_s11 + $0xc0] sm:$0xff] %v1366_v7   ;;  %v613_v10 = vpop.f32.mrf.mxu2  ;;  %v653_v11 = vpop.f32.mrf.mxu3 }
  0xc8   : > { %v535_v12 = vpop.f32.mrf.mxu0  ;;  %v575_v13 = vpop.f32.mrf.mxu1  ;;  %v726_v22 = vmul.f32 %v1705_v42, %v613_v10  ;;  %v742_v23 = vmul.f32 %v1705_v42, %v653_v11 }
  0xc9   : > { %v695_v14 = vmul.f32 %v1705_v42, %v535_v12  ;;  %v711_v15 = vmul.f32 %v1705_v42, %v575_v13 }
  0xca   : > { %v794_v30 = vadd.f32 %v1712_v44, %v726_v22  ;;  %v810_v31 = vadd.f32 %v1712_v44, %v742_v23 }
  0xcb   : > { %v763_v18 = vadd.f32 %v1712_v44, %v695_v14  ;;  %v779_v19 = vadd.f32 %v1712_v44, %v711_v15 }
  0xcd   : > { %v1251_v20 = vpack.c.bf16 %v763_v18, %v762_v16  ;;  %v1291_v21 = vpack.c.bf16 %v779_v19, %v778_v17 }
  0xcf   : > { %1403 = vst [vmem:[%s1725_s11 + $0x8] sm:$0xff] %v1251_v20   ;;  %v615_v24 = vpop.f32.mrf.mxu2  ;;  %v655_v25 = vpop.f32.mrf.mxu3 }
  0xd0   : > { %1411 = vst [vmem:[%s1725_s11 + $0x48] sm:$0xff] %v1291_v21   ;;  %v727_v26 = vmul.f32 %v1705_v42, %v615_v24  ;;  %v743_v27 = vmul.f32 %v1705_v42, %v655_v25  ;;  %v538_v28 = vpop.f32.mrf.mxu0  ;;  %v578_v29 = vpop.f32.mrf.mxu1 }
  0xd1   : > { %v696_v36 = vmul.f32 %v1705_v42, %v538_v28  ;;  %v712_v37 = vmul.f32 %v1705_v42, %v578_v29 }
  0xd2   : > { %v795_v32 = vadd.f32 %v1712_v44, %v727_v26  ;;  %v811_v33 = vadd.f32 %v1712_v44, %v743_v27 }
  0xd3   : > { %v764_v46 = vadd.f32 %v1712_v44, %v696_v36  ;;  %v780_v47 = vadd.f32 %v1712_v44, %v712_v37 }
  0xd4   : > { %v1331_v34 = vpack.c.bf16 %v795_v32, %v794_v30  ;;  %v1371_v35 = vpack.c.bf16 %v811_v33, %v810_v31 }
  0xd6   : > { %1419 = vst [vmem:[%s1725_s11 + $0x88] sm:$0xff] %v1331_v34  }
  0xd7   : > { %1427 = vst [vmem:[%s1725_s11 + $0xc8] sm:$0xff] %v1371_v35   ;;  %v618_v38 = vpop.f32.mrf.mxu2  ;;  %v658_v39 = vpop.f32.mrf.mxu3 }
  0xd8   : > { %v540_v40 = vpop.f32.mrf.mxu0  ;;  %v580_v41 = vpop.f32.mrf.mxu1  ;;  %v728_v52 = vmul.f32 %v1705_v42, %v618_v38  ;;  %v744_v53 = vmul.f32 %v1705_v42, %v658_v39 }
  0xd9   : > { %v697_v43 = vmul.f32 %v1705_v42, %v540_v40  ;;  %v713_v45 = vmul.f32 %v1705_v42, %v580_v41 }
  0xda   : > { %v796_v60 = vadd.f32 %v1712_v44, %v728_v52  ;;  %v812_v61 = vadd.f32 %v1712_v44, %v744_v53 }
  0xdb   : > { %v765_v48 = vadd.f32 %v1712_v44, %v697_v43  ;;  %v781_v49 = vadd.f32 %v1712_v44, %v713_v45 }
  0xdd   : > { %v1256_v50 = vpack.c.bf16 %v765_v48, %v764_v46  ;;  %v1296_v51 = vpack.c.bf16 %v781_v49, %v780_v47 }
  0xdf   : > { %1404 = vst [vmem:[%s1725_s11 + $0x10] sm:$0xff] %v1256_v50   ;;  %v620_v54 = vpop.f32.mrf.mxu2  ;;  %v660_v55 = vpop.f32.mrf.mxu3 }
  0xe0   : > { %1412 = vst [vmem:[%s1725_s11 + $0x50] sm:$0xff] %v1296_v51   ;;  %v729_v56 = vmul.f32 %v1705_v42, %v620_v54  ;;  %v745_v57 = vmul.f32 %v1705_v42, %v660_v55  ;;  %v543_v58 = vpop.f32.mrf.mxu0  ;;  %v583_v59 = vpop.f32.mrf.mxu1 }
  0xe1   : > { %v698_v2 = vmul.f32 %v1705_v42, %v543_v58  ;;  %v714_v3 = vmul.f32 %v1705_v42, %v583_v59 }
  0xe2   : > { %v797_v62 = vadd.f32 %v1712_v44, %v729_v56  ;;  %v813_v63 = vadd.f32 %v1712_v44, %v745_v57 }
  0xe3   : > { %v766_v10 = vadd.f32 %v1712_v44, %v698_v2  ;;  %v782_v11 = vadd.f32 %v1712_v44, %v714_v3 }
  0xe4   : > { %v1336_v0 = vpack.c.bf16 %v797_v62, %v796_v60  ;;  %v1376_v1 = vpack.c.bf16 %v813_v63, %v812_v61 }
  0xe6   : > { %1420 = vst [vmem:[%s1725_s11 + $0x90] sm:$0xff] %v1336_v0  }
  0xe7   : > { %1428 = vst [vmem:[%s1725_s11 + $0xd0] sm:$0xff] %v1376_v1   ;;  %v623_v4 = vpop.f32.mrf.mxu2  ;;  %v663_v5 = vpop.f32.mrf.mxu3 }
  0xe8   : > { %v545_v6 = vpop.f32.mrf.mxu0  ;;  %v585_v7 = vpop.f32.mrf.mxu1  ;;  %v730_v16 = vmul.f32 %v1705_v42, %v623_v4  ;;  %v746_v17 = vmul.f32 %v1705_v42, %v663_v5 }
  0xe9   : > { %v699_v8 = vmul.f32 %v1705_v42, %v545_v6  ;;  %v715_v9 = vmul.f32 %v1705_v42, %v585_v7 }
  0xea   : > { %v798_v24 = vadd.f32 %v1712_v44, %v730_v16  ;;  %v814_v25 = vadd.f32 %v1712_v44, %v746_v17 }
  0xeb   : > { %v767_v12 = vadd.f32 %v1712_v44, %v699_v8  ;;  %v783_v13 = vadd.f32 %v1712_v44, %v715_v9 }
  0xed   : > { %v1261_v14 = vpack.c.bf16 %v767_v12, %v766_v10  ;;  %v1301_v15 = vpack.c.bf16 %v783_v13, %v782_v11 }
  0xef   : > { %1405 = vst [vmem:[%s1725_s11 + $0x18] sm:$0xff] %v1261_v14   ;;  %v625_v18 = vpop.f32.mrf.mxu2  ;;  %v665_v19 = vpop.f32.mrf.mxu3 }
  0xf0   : > { %1413 = vst [vmem:[%s1725_s11 + $0x58] sm:$0xff] %v1301_v15   ;;  %v731_v20 = vmul.f32 %v1705_v42, %v625_v18  ;;  %v747_v21 = vmul.f32 %v1705_v42, %v665_v19  ;;  %v548_v22 = vpop.f32.mrf.mxu0  ;;  %v588_v23 = vpop.f32.mrf.mxu1 }
  0xf1   : > { %v700_v30 = vmul.f32 %v1705_v42, %v548_v22  ;;  %v716_v31 = vmul.f32 %v1705_v42, %v588_v23 }
  0xf2   : > { %v799_v26 = vadd.f32 %v1712_v44, %v731_v20  ;;  %v815_v27 = vadd.f32 %v1712_v44, %v747_v21 }
  0xf3   : > { %v768_v38 = vadd.f32 %v1712_v44, %v700_v30  ;;  %v784_v39 = vadd.f32 %v1712_v44, %v716_v31 }
  0xf4   : > { %v1341_v28 = vpack.c.bf16 %v799_v26, %v798_v24  ;;  %v1381_v29 = vpack.c.bf16 %v815_v27, %v814_v25 }
  0xf6   : > { %1421 = vst [vmem:[%s1725_s11 + $0x98] sm:$0xff] %v1341_v28  }
  0xf7   : > { %1429 = vst [vmem:[%s1725_s11 + $0xd8] sm:$0xff] %v1381_v29   ;;  %v628_v32 = vpop.f32.mrf.mxu2  ;;  %v668_v33 = vpop.f32.mrf.mxu3 }
  0xf8   : > { %v550_v34 = vpop.f32.mrf.mxu0  ;;  %v590_v35 = vpop.f32.mrf.mxu1  ;;  %v732_v46 = vmul.f32 %v1705_v42, %v628_v32  ;;  %v748_v47 = vmul.f32 %v1705_v42, %v668_v33 }
  0xf9   : > { %v701_v36 = vmul.f32 %v1705_v42, %v550_v34  ;;  %v717_v37 = vmul.f32 %v1705_v42, %v590_v35 }
  0xfa   : > { %v800_v54 = vadd.f32 %v1712_v44, %v732_v46  ;;  %v816_v55 = vadd.f32 %v1712_v44, %v748_v47 }
  0xfb   : > { %v769_v40 = vadd.f32 %v1712_v44, %v701_v36  ;;  %v785_v41 = vadd.f32 %v1712_v44, %v717_v37 }
  0xfd   : > { %v1266_v43 = vpack.c.bf16 %v769_v40, %v768_v38  ;;  %v1306_v45 = vpack.c.bf16 %v785_v41, %v784_v39 }
  0xff   : > { %1406 = vst [vmem:[%s1725_s11 + $0x20] sm:$0xff] %v1266_v43   ;;  %v630_v48 = vpop.f32.mrf.mxu2  ;;  %v670_v49 = vpop.f32.mrf.mxu3 }
 0x100   : > { %1414 = vst [vmem:[%s1725_s11 + $0x60] sm:$0xff] %v1306_v45   ;;  %v733_v50 = vmul.f32 %v1705_v42, %v630_v48  ;;  %v749_v51 = vmul.f32 %v1705_v42, %v670_v49  ;;  %v553_v52 = vpop.f32.mrf.mxu0  ;;  %v593_v53 = vpop.f32.mrf.mxu1 }
 0x101   : > { %v702_v60 = vmul.f32 %v1705_v42, %v553_v52  ;;  %v718_v61 = vmul.f32 %v1705_v42, %v593_v53 }
 0x102   : > { %v801_v56 = vadd.f32 %v1712_v44, %v733_v50  ;;  %v817_v57 = vadd.f32 %v1712_v44, %v749_v51 }
 0x103   : > { %v770_v4 = vadd.f32 %v1712_v44, %v702_v60  ;;  %v786_v5 = vadd.f32 %v1712_v44, %v718_v61 }
 0x104   : > { %v1346_v58 = vpack.c.bf16 %v801_v56, %v800_v54  ;;  %v1386_v59 = vpack.c.bf16 %v817_v57, %v816_v55 }
 0x106   : > { %1422 = vst [vmem:[%s1725_s11 + $0xa0] sm:$0xff] %v1346_v58  }
 0x107   : > { %1430 = vst [vmem:[%s1725_s11 + $0xe0] sm:$0xff] %v1386_v59   ;;  %v633_v62 = vpop.f32.mrf.mxu2  ;;  %v673_v63 = vpop.f32.mrf.mxu3 }
 0x108   : > { %v555_v0 = vpop.f32.mrf.mxu0  ;;  %v595_v1 = vpop.f32.mrf.mxu1  ;;  %v734_v10 = vmul.f32 %v1705_v42, %v633_v62  ;;  %v750_v11 = vmul.f32 %v1705_v42, %v673_v63 }
 0x109   : > { %v703_v2 = vmul.f32 %v1705_v42, %v555_v0  ;;  %v719_v3 = vmul.f32 %v1705_v42, %v595_v1 }
 0x10a   : > { %v802_v18 = vadd.f32 %v1712_v44, %v734_v10  ;;  %v818_v19 = vadd.f32 %v1712_v44, %v750_v11 }
 0x10b   : > { %v771_v6 = vadd.f32 %v1712_v44, %v703_v2  ;;  %v787_v7 = vadd.f32 %v1712_v44, %v719_v3 }
 0x10d   : > { %v1271_v8 = vpack.c.bf16 %v771_v6, %v770_v4  ;;  %v1311_v9 = vpack.c.bf16 %v787_v7, %v786_v5 }
 0x10f   : > { %1407 = vst [vmem:[%s1725_s11 + $0x28] sm:$0xff] %v1271_v8   ;;  %v635_v12 = vpop.f32.mrf.mxu2  ;;  %v675_v13 = vpop.f32.mrf.mxu3 }
 0x110   : > { %1415 = vst [vmem:[%s1725_s11 + $0x68] sm:$0xff] %v1311_v9   ;;  %v735_v14 = vmul.f32 %v1705_v42, %v635_v12  ;;  %v751_v15 = vmul.f32 %v1705_v42, %v675_v13  ;;  %v558_v16 = vpop.f32.mrf.mxu0  ;;  %v598_v17 = vpop.f32.mrf.mxu1 }
 0x111   : > { %v704_v24 = vmul.f32 %v1705_v42, %v558_v16  ;;  %v720_v25 = vmul.f32 %v1705_v42, %v598_v17 }
 0x112   : > { %v803_v20 = vadd.f32 %v1712_v44, %v735_v14  ;;  %v819_v21 = vadd.f32 %v1712_v44, %v751_v15 }
 0x113   : > { %v772_v32 = vadd.f32 %v1712_v44, %v704_v24  ;;  %v788_v33 = vadd.f32 %v1712_v44, %v720_v25 }
 0x114   : > { %v1351_v22 = vpack.c.bf16 %v803_v20, %v802_v18  ;;  %v1391_v23 = vpack.c.bf16 %v819_v21, %v818_v19 }
 0x116   : > { %1423 = vst [vmem:[%s1725_s11 + $0xa8] sm:$0xff] %v1351_v22  }
 0x117   : > { %1431 = vst [vmem:[%s1725_s11 + $0xe8] sm:$0xff] %v1391_v23   ;;  %v638_v26 = vpop.f32.mrf.mxu2  ;;  %v678_v27 = vpop.f32.mrf.mxu3 }
 0x118   : > { %v560_v28 = vpop.f32.mrf.mxu0  ;;  %v600_v29 = vpop.f32.mrf.mxu1  ;;  %v736_v38 = vmul.f32 %v1705_v42, %v638_v26  ;;  %v752_v39 = vmul.f32 %v1705_v42, %v678_v27 }
 0x119   : > { %v705_v30 = vmul.f32 %v1705_v42, %v560_v28  ;;  %v721_v31 = vmul.f32 %v1705_v42, %v600_v29 }
 0x11a   : > { %v804_v48 = vadd.f32 %v1712_v44, %v736_v38  ;;  %v820_v49 = vadd.f32 %v1712_v44, %v752_v39 }
 0x11b   : > { %v773_v34 = vadd.f32 %v1712_v44, %v705_v30  ;;  %v789_v35 = vadd.f32 %v1712_v44, %v721_v31 }
 0x11d   : > { %v1276_v36 = vpack.c.bf16 %v773_v34, %v772_v32  ;;  %v1316_v37 = vpack.c.bf16 %v789_v35, %v788_v33 }
 0x11f   : > { %1408 = vst [vmem:[%s1725_s11 + $0x30] sm:$0xff] %v1276_v36   ;;  %v640_v40 = vpop.f32.mrf.mxu2  ;;  %v680_v41 = vpop.f32.mrf.mxu3 }
 0x120   : > { %1416 = vst [vmem:[%s1725_s11 + $0x70] sm:$0xff] %v1316_v37   ;;  %v737_v43 = vmul.f32 %v1705_v42, %v640_v40  ;;  %v753_v45 = vmul.f32 %v1705_v42, %v680_v41  ;;  %v563_v46 = vpop.f32.mrf.mxu0  ;;  %v603_v47 = vpop.f32.mrf.mxu1 }
 0x121   : > { %v706_v54 = vmul.f32 %v1705_v42, %v563_v46  ;;  %v722_v55 = vmul.f32 %v1705_v42, %v603_v47 }
 0x122   : > { %v805_v50 = vadd.f32 %v1712_v44, %v737_v43  ;;  %v821_v51 = vadd.f32 %v1712_v44, %v753_v45 }
 0x123   : > { %v774_v62 = vadd.f32 %v1712_v44, %v706_v54  ;;  %v790_v63 = vadd.f32 %v1712_v44, %v722_v55 }
 0x124   : > { %v1356_v52 = vpack.c.bf16 %v805_v50, %v804_v48  ;;  %v1396_v53 = vpack.c.bf16 %v821_v51, %v820_v49 }
 0x126   : > { %1424 = vst [vmem:[%s1725_s11 + $0xb0] sm:$0xff] %v1356_v52  }
 0x127   : > { %1432 = vst [vmem:[%s1725_s11 + $0xf0] sm:$0xff] %v1396_v53   ;;  %v643_v56 = vpop.f32.mrf.mxu2  ;;  %v683_v57 = vpop.f32.mrf.mxu3 }
 0x128   : > { %v565_v58 = vpop.f32.mrf.mxu0  ;;  %v605_v59 = vpop.f32.mrf.mxu1  ;;  %v738_v4 = vmul.f32 %v1705_v42, %v643_v56  ;;  %v754_v5 = vmul.f32 %v1705_v42, %v683_v57 }
 0x129   : > { %v707_v60 = vmul.f32 %v1705_v42, %v565_v58  ;;  %v723_v61 = vmul.f32 %v1705_v42, %v605_v59 }
 0x12a   : > { %v806_v10 = vadd.f32 %v1712_v44, %v738_v4  ;;  %v822_v11 = vadd.f32 %v1712_v44, %v754_v5 }
 0x12b   : > { %v775_v0 = vadd.f32 %v1712_v44, %v707_v60  ;;  %v791_v1 = vadd.f32 %v1712_v44, %v723_v61 }
 0x12d   : > { %v1281_v2 = vpack.c.bf16 %v775_v0, %v774_v62  ;;  %v1321_v3 = vpack.c.bf16 %v791_v1, %v790_v63 }
 0x12f   : > { %1409 = vst [vmem:[%s1725_s11 + $0x38] sm:$0xff] %v1281_v2   ;;  %v645_v6 = vpop.f32.mrf.mxu2  ;;  %v685_v7 = vpop.f32.mrf.mxu3 }
 0x130   : > { %1417 = vst [vmem:[%s1725_s11 + $0x78] sm:$0xff] %v1321_v3   ;;  %v739_v8 = vmul.f32 %v1705_v42, %v645_v6  ;;  %v755_v9 = vmul.f32 %v1705_v42, %v685_v7 }
 0x132   : > { %v807_v12 = vadd.f32 %v1712_v44, %v739_v8  ;;  %v823_v13 = vadd.f32 %v1712_v44, %v755_v9 }
 0x134   : > { %v1361_v14 = vpack.c.bf16 %v807_v12, %v806_v10  ;;  %v1401_v15 = vpack.c.bf16 %v823_v13, %v822_v11 }
 0x136   : > { %1425 = vst [vmem:[%s1725_s11 + $0xb8] sm:$0xff] %v1361_v14  }
 0x137   : > { %1433 = vst [vmem:[%s1725_s11 + $0xf8] sm:$0xff] %v1401_v15  }
 0x138   : > { %1528 = shalt.err (!%p1525_p3)
}
 0x139   : > { %s1565_s7 = smov 64   ;;  %s1566_s9 = smov 4  }
 0x13a   : > { %1458 = dma.vmem_to_hbm [thread:$0]  (%p1630_p5), %s966_s19, 4096, %s968_s22, %s953_s23, %s1565_s7, %s1565_s7, %s1566_s9  }
 0x13b PF: > { %p1464_p4 = scmp.ge.s32.totalorder %s1563_s18, 2  ;;  %s982_s10 = sand.u32 1, %s1551_s15  }
 0x13c   : > { %s983_s11 = scalar_lea.sflag [#allocation3], %s982_s10 }
 0x13d   : > { %p1461_p7 = pnand %p1464_p4, %p1634_p6 }
 0x13f   : > { %p1462_p8 = pneg %p1461_p7 }
 0x141   : > { %1546 = dma.done.wait (%p1462_p8), %s983_s11, 4096  }
 0x142   : > { %1548 = vsyncadd (%p1462_p8), %s983_s11, 4294963200  ;;  %p14_p9 = scmp.ge.s32.totalorder %s1617_s21, 6   ;;  %s1918_s15 = smov %s1555_s16 }
 0x143   : > { %s1919_s16 = smov %s1559_s17  ;;  %s1920_s17 = smov %s1628_s24 }
 0x144   : > { %s1921_s18 = smov %s1617_s21  ;;  %16 = sbr.rel (!%p14_p9) target bundleno = 3 (0x3), region = 71 }
 0x149   :  { %989 = vsyncpa [#allocation3], 1 }
 0x14a   :  { %991 = vsyncpa [#allocation3 + $0x1], 1 }

</bundles_post_ra>
